<compile_context>
chip_gen: v5e
topology: v5e:2x2
jax: 0.10.0
libtpu: 0.0.40
codegen_flags: <defaults>
</compile_context>

<pallas_src>
import functools

import jax
import jax.numpy as jnp
from jax.experimental import pallas as pl
from jax.experimental.pallas import tpu as pltpu


def _round_up(x, m):
    return ((x + m - 1) // m) * m


def _wce_ls_kernel(inputs_ref, targets_ref, distmat_ref, part_ref, *,
                   batch, block_rows, ragged):
    """Process one batch tile and emit per-tile partial sums.

    part_ref block is (1, 8, 128); sublane 0 holds S_pick, sublane 1 holds
    S_dm, sublane 2 holds S_sum (broadcast across lanes -> unmasked vst).
    """
    x = inputs_ref[...].astype(jnp.float32)      # (TB, C) logits (f32/bf16 ok)
    t = targets_ref[...]                         # (TB, 1) int32 labels
    dm = distmat_ref[...].astype(jnp.float32)    # (TB, Dp) distmat (lane-padded)

    tb, c = x.shape
    dp = dm.shape[1]

    if ragged:
        # Valid-row mask only when the last tile overhangs the batch.
        i = pl.program_id(0)
        row = jax.lax.broadcasted_iota(jnp.int32, (tb, 1), 0) + i * block_rows
        valid = row < batch                      # (TB, 1) bool
        # Zero stale rows *before* softmax / products so OOB data can't NaN.
        x = jnp.where(valid, x, 0.0)
        dm = jnp.where(valid, dm, 0.0)

    # Numerically stable log_softmax pieces; log_probs is NOT materialized.
    m = jnp.max(x, axis=1, keepdims=True)        # (TB, 1)
    shifted = x - m                              # (TB, C) — only full-size temp
    lse = jnp.log(jnp.sum(jnp.exp(shifted), axis=1, keepdims=True))  # (TB, 1)

    # S_pick = sum_i shifted[i, t_i] - sum_i lse_i   (valid rows only)
    col = jax.lax.broadcasted_iota(jnp.int32, (tb, c), 1)
    pick_mask = col == t
    if ragged:
        pick_mask = jnp.logical_and(pick_mask, valid)
        lse_pick = jnp.where(valid, lse, 0.0)
    else:
        lse_pick = lse
    p_pick = jnp.sum(jnp.where(pick_mask, shifted, 0.0)) - jnp.sum(lse_pick)

    # S_dm = sum(dm * shifted[:, :Dp]) - sum_i rowsum(dm)_i * lse_i
    # (padded dm columns are zero; invalid rows have dm == 0 so no extra mask)
    dm_rowsum = jnp.sum(dm, axis=1, keepdims=True)               # (TB, 1)
    shifted_d = shifted[:, :dp] if dp < c else shifted           # lane-aligned
    p_dm = jnp.sum(dm * shifted_d) - jnp.sum(dm_rowsum * lse)
    p_sum = jnp.sum(dm_rowsum)

    # Lane-dense (8, 128) output block: sublane r broadcast-holds partial r.
    sub = jax.lax.broadcasted_iota(jnp.int32, (1, 8, 128), 1)
    part_ref[...] = jnp.where(
        sub == 0, p_pick,
        jnp.where(sub == 1, p_dm,
                  jnp.where(sub == 2, p_sum, 0.0)))


def _choose_block_rows(batch, num_classes, dist_cols, in_dtype):
    """Pick the batch tile.

    ~8 MiB per tile (~2x that double-buffered across the three input streams),
    rows a multiple of 8 (16 for bf16 sublane packing), capped at 2048.  When
    the batch is big enough, force at least 2 (ideally 4) tiles so v7x's two
    TensorCores both get work via the 'parallel' grid axis.
    """
    itemsize = jnp.dtype(in_dtype).itemsize
    row_mult = 16 if itemsize == 2 else 8
    if batch < 2 * row_mult:
        return batch, row_mult                   # single tile == full batch dim

    row_bytes = num_classes * itemsize + dist_cols * 4 + 4
    budget = 8 * 1024 * 1024                     # ~8 MiB per tile
    tb = budget // max(row_bytes, 1)
    tb = max(row_mult, min(2048, (tb // row_mult) * row_mult))

    splits = 4 if batch >= 4 * row_mult else 2   # >=2 tiles (>=4 for larger B)
    tb = min(tb, _round_up(-(-batch // splits), row_mult))
    return tb, row_mult


def weighted_cross_entropy_label_smooth(inputs, targets, distmat, *,
                                        epsilon=0.2, block_rows=None):
    """inputs: (B, C) logits (f32 or bf16); targets: (B,) int; distmat: (B, D), D <= C."""
    B, C = inputs.shape
    D = distmat.shape[1]
    itemsize = jnp.dtype(inputs.dtype).itemsize

    # Lane-align the distmat class columns (zero-pad up to a multiple of 128,
    # capped at C) so the in-kernel product slice never crosses a vreg tile.
    Dp = min(_round_up(D, 128), C)
    if Dp != D:
        distmat = jnp.pad(distmat, ((0, 0), (0, Dp - D)))

    if block_rows is None:
        tb, row_mult = _choose_block_rows(B, C, Dp, inputs.dtype)
    else:
        row_mult = 16 if itemsize == 2 else 8
        tb = min(int(block_rows), B)
        if tb < B:                               # tiled blocks: multiple of row_mult
            tb = max(row_mult, (tb // row_mult) * row_mult)
    grid = pl.cdiv(B, tb)
    ragged = (B % tb) != 0

    t2 = targets.astype(jnp.int32).reshape(B, 1)

    # Explicit scoped-VMEM limit covering the double-buffered streams; clamped
    # well under v7x's 64 MiB physical VMEM (and fine on v5e/v6e's 128 MiB).
    row_bytes = C * itemsize + Dp * 4 + 4
    tile_bytes = tb * row_bytes
    vmem_limit = int(min(max(16 << 20, int(2.5 * tile_bytes) + (2 << 20)),
                         40 << 20))

    cost = pl.CostEstimate(
        flops=5 * B * C,
        transcendentals=B * C,
        bytes_accessed=B * C * itemsize + B * Dp * 4 + B * 4 + grid * 8 * 128 * 4)

    partials = pl.pallas_call(
        functools.partial(_wce_ls_kernel, batch=B, block_rows=tb, ragged=ragged),
        out_shape=jax.ShapeDtypeStruct((grid, 8, 128), jnp.float32),
        grid=(grid,),
        in_specs=[
            pl.BlockSpec((tb, C), lambda i: (i, 0)),    # logits tile
            pl.BlockSpec((tb, 1), lambda i: (i, 0)),    # labels tile
            pl.BlockSpec((tb, Dp), lambda i: (i, 0)),   # lane-padded distmat tile
        ],
        out_specs=pl.BlockSpec((1, 8, 128), lambda i: (i, 0, 0)),
        compiler_params=pltpu.CompilerParams(
            dimension_semantics=("parallel",),          # batch tiles independent
            vmem_limit_bytes=vmem_limit),
        cost_estimate=cost,
    )(inputs, t2, distmat)

    # Tiny final reduction + scalar epilogue in plain JAX (XLA fuses it).
    s_pick = jnp.sum(partials[:, 0, 0])
    s_dm = jnp.sum(partials[:, 1, 0])
    s_sum = jnp.sum(partials[:, 2, 0])   # NaN if distmat sums to 0 — matches PyTorch reference
    loss = -((1.0 - epsilon) * s_pick + epsilon * (s_dm / s_sum)) / jnp.float32(B)
    return loss


def _reference(inputs, targets, distmat, epsilon=0.2):
    B, C = inputs.shape
    D = distmat.shape[1]
    fdm = jnp.zeros((B, C), jnp.float32).at[:, :D].set(distmat.astype(jnp.float32))
    fdm = fdm / jnp.sum(fdm)
    log_probs = jax.nn.log_softmax(inputs.astype(jnp.float32), axis=1)
    onehot = jax.nn.one_hot(targets, C, dtype=jnp.float32)
    smooth = (1.0 - epsilon) * onehot + epsilon * fdm
    return jnp.sum(jnp.mean(-smooth * log_probs, axis=0))


if __name__ == "__main__":
    epsilon = 0.2
    key = jax.random.PRNGKey(0)
    k1, k2, k3, k4, k5, k6 = jax.random.split(key, 6)

    # Case 1: tiny module-sized problem (single block, grid=1, D < C < 128 so
    # the lane-pad path clamps to C).
    B1, C1, D1 = 8, 16, 12
    inp1 = jax.random.normal(k1, (B1, C1), dtype=jnp.float32)
    tgt1 = jax.random.randint(k2, (B1,), 0, C1, dtype=jnp.int32)
    dm1 = jax.random.uniform(k3, (B1, D1), dtype=jnp.float32)
    loss1 = jax.block_until_ready(
        weighted_cross_entropy_label_smooth(inp1, tgt1, dm1, epsilon=epsilon))
    ref1 = jax.block_until_ready(_reference(inp1, tgt1, dm1, epsilon))
    assert jnp.allclose(loss1, ref1, rtol=1e-5, atol=1e-5), (loss1, ref1)

    # Case 2: multi-tile grid with a ragged last batch tile (exercises masking,
    # the lane-padded distmat slice, and the parallel-partials reduction).
    B2, C2, D2 = 20, 256, 100
    inp2 = jax.random.normal(k4, (B2, C2), dtype=jnp.float32)
    tgt2 = jax.random.randint(k5, (B2,), 0, C2, dtype=jnp.int32)
    dm2 = jax.random.uniform(k6, (B2, D2), dtype=jnp.float32)
    loss2 = jax.block_until_ready(
        weighted_cross_entropy_label_smooth(inp2, tgt2, dm2, epsilon=epsilon,
                                            block_rows=8))
    ref2 = jax.block_until_ready(_reference(inp2, tgt2, dm2, epsilon))
    assert jnp.allclose(loss2, ref2, rtol=1e-4, atol=1e-5), (loss2, ref2)

    # Case 3: auto tile-size path with a batch big enough to force >=2 tiles
    # (v7x dual-TC split) and an exact multiple of the tile (no ragged masking).
    B3, C3, D3 = 64, 384, 128
    k7, k8, k9 = jax.random.split(k6, 3)
    inp3 = jax.random.normal(k7, (B3, C3), dtype=jnp.float32)
    tgt3 = jax.random.randint(k8, (B3,), 0, C3, dtype=jnp.int32)
    dm3 = jax.random.uniform(k9, (B3, D3), dtype=jnp.float32)
    loss3 = jax.block_until_ready(
        weighted_cross_entropy_label_smooth(inp3, tgt3, dm3, epsilon=epsilon))
    ref3 = jax.block_until_ready(_reference(inp3, tgt3, dm3, epsilon))
    assert jnp.allclose(loss3, ref3, rtol=1e-4, atol=1e-5), (loss3, ref3)

    print("KERNEL_OK")
</pallas_src>

<mosaic_0001>
module attributes {stable_mosaic.version = 11 : i64} {
  func.func @_wce_ls_kernel(%arg0: i32, %arg1: memref<8x16xf32, #tpu.memory_space<vmem>>, %arg2: memref<8x1xi32, #tpu.memory_space<vmem>>, %arg3: memref<8x16xf32, #tpu.memory_space<vmem>>, %arg4: memref<1x8x128xf32, #tpu.memory_space<vmem>>) attributes {dimension_semantics = [#tpu.dimension_semantics<parallel>], iteration_bounds = array<i64: 1>, scalar_prefetch = 0 : i64, scratch_operands = 0 : i64, tpu.core_type = #tpu.core_type<tc>, window_params = [{transform_indices = @transform_0, window_bounds = array<i64: 8, 16>}, {transform_indices = @transform_1, window_bounds = array<i64: 8, 1>}, {transform_indices = @transform_2, window_bounds = array<i64: 8, 16>}, {transform_indices = @transform_3, window_bounds = array<i64: 1, 8, 128>}]} {
    %c0 = arith.constant 0 : index
    %c0_0 = arith.constant 0 : index
    %0 = vector.load %arg1[%c0, %c0_0] : memref<8x16xf32, #tpu.memory_space<vmem>>, vector<8x16xf32>
    %c0_1 = arith.constant 0 : index
    %c0_2 = arith.constant 0 : index
    %1 = vector.load %arg2[%c0_1, %c0_2] : memref<8x1xi32, #tpu.memory_space<vmem>>, vector<8x1xi32>
    %c0_3 = arith.constant 0 : index
    %c0_4 = arith.constant 0 : index
    %2 = vector.load %arg3[%c0_3, %c0_4] : memref<8x16xf32, #tpu.memory_space<vmem>>, vector<8x16xf32>
    %cst = arith.constant dense<0xFF800000> : vector<8xf32>
    %3 = vector.multi_reduction <maximumf>, %0, %cst [1] : vector<8x16xf32> to vector<8xf32>
    %4 = vector.shape_cast %3 : vector<8xf32> to vector<8x1xf32>
    %5 = vector.broadcast %4 : vector<8x1xf32> to vector<8x16xf32>
    %6 = arith.subf %0, %5 : vector<8x16xf32>
    %7 = math.exp %6 : vector<8x16xf32>
    %cst_5 = arith.constant dense<0.000000e+00> : vector<8xf32>
    %8 = vector.multi_reduction <add>, %7, %cst_5 [1] : vector<8x16xf32> to vector<8xf32>
    %9 = vector.shape_cast %8 : vector<8xf32> to vector<8x1xf32>
    %10 = math.log %9 : vector<8x1xf32>
    %11 = tpu.iota {dimensions = array<i32: 1>} : vector<8x16xi32>
    %12 = vector.broadcast %1 : vector<8x1xi32> to vector<8x16xi32>
    %13 = arith.cmpi eq, %11, %12 : vector<8x16xi32>
    %cst_6 = arith.constant 0.000000e+00 : f32
    %14 = vector.broadcast %cst_6 : f32 to vector<8x16xf32>
    %15 = arith.select %13, %6, %14 : vector<8x16xi1>, vector<8x16xf32>
    %16 = vector.shape_cast %15 : vector<8x16xf32> to vector<1x8x16xf32>
    %cst_7 = arith.constant dense<0.000000e+00> : vector<1xf32>
    %17 = vector.multi_reduction <add>, %16, %cst_7 [1, 2] : vector<1x8x16xf32> to vector<1xf32>
    %18 = vector.shape_cast %17 : vector<1xf32> to vector<1x1x1xf32>
    %19 = vector.extract %18[0, 0, 0] : f32 from vector<1x1x1xf32>
    %20 = vector.shape_cast %10 : vector<8x1xf32> to vector<1x8x1xf32>
    %cst_8 = arith.constant dense<0.000000e+00> : vector<1xf32>
    %21 = vector.multi_reduction <add>, %20, %cst_8 [1, 2] : vector<1x8x1xf32> to vector<1xf32>
    %22 = vector.shape_cast %21 : vector<1xf32> to vector<1x1x1xf32>
    %23 = vector.extract %22[0, 0, 0] : f32 from vector<1x1x1xf32>
    %24 = arith.subf %19, %23 : f32
    %cst_9 = arith.constant dense<0.000000e+00> : vector<8xf32>
    %25 = vector.multi_reduction <add>, %2, %cst_9 [1] : vector<8x16xf32> to vector<8xf32>
    %26 = vector.shape_cast %25 : vector<8xf32> to vector<8x1xf32>
    %27 = arith.mulf %2, %6 : vector<8x16xf32>
    %28 = vector.shape_cast %27 : vector<8x16xf32> to vector<1x8x16xf32>
    %cst_10 = arith.constant dense<0.000000e+00> : vector<1xf32>
    %29 = vector.multi_reduction <add>, %28, %cst_10 [1, 2] : vector<1x8x16xf32> to vector<1xf32>
    %30 = vector.shape_cast %29 : vector<1xf32> to vector<1x1x1xf32>
    %31 = vector.extract %30[0, 0, 0] : f32 from vector<1x1x1xf32>
    %32 = arith.mulf %26, %10 : vector<8x1xf32>
    %33 = vector.shape_cast %32 : vector<8x1xf32> to vector<1x8x1xf32>
    %cst_11 = arith.constant dense<0.000000e+00> : vector<1xf32>
    %34 = vector.multi_reduction <add>, %33, %cst_11 [1, 2] : vector<1x8x1xf32> to vector<1xf32>
    %35 = vector.shape_cast %34 : vector<1xf32> to vector<1x1x1xf32>
    %36 = vector.extract %35[0, 0, 0] : f32 from vector<1x1x1xf32>
    %37 = arith.subf %31, %36 : f32
    %38 = vector.shape_cast %26 : vector<8x1xf32> to vector<1x8x1xf32>
    %cst_12 = arith.constant dense<0.000000e+00> : vector<1xf32>
    %39 = vector.multi_reduction <add>, %38, %cst_12 [1, 2] : vector<1x8x1xf32> to vector<1xf32>
    %40 = vector.shape_cast %39 : vector<1xf32> to vector<1x1x1xf32>
    %41 = vector.extract %40[0, 0, 0] : f32 from vector<1x1x1xf32>
    %42 = tpu.iota {dimensions = array<i32: 1>} : vector<1x8x128xi32>
    %c0_i32 = arith.constant 0 : i32
    %43 = vector.broadcast %c0_i32 : i32 to vector<1x8x128xi32>
    %44 = arith.cmpi eq, %42, %43 : vector<1x8x128xi32>
    %c1_i32 = arith.constant 1 : i32
    %45 = vector.broadcast %c1_i32 : i32 to vector<1x8x128xi32>
    %46 = arith.cmpi eq, %42, %45 : vector<1x8x128xi32>
    %c2_i32 = arith.constant 2 : i32
    %47 = vector.broadcast %c2_i32 : i32 to vector<1x8x128xi32>
    %48 = arith.cmpi eq, %42, %47 : vector<1x8x128xi32>
    %cst_13 = arith.constant 0.000000e+00 : f32
    %49 = vector.broadcast %41 : f32 to vector<1x8x128xf32>
    %50 = vector.broadcast %cst_13 : f32 to vector<1x8x128xf32>
    %51 = arith.select %48, %49, %50 : vector<1x8x128xi1>, vector<1x8x128xf32>
    %52 = vector.broadcast %37 : f32 to vector<1x8x128xf32>
    %53 = arith.select %46, %52, %51 : vector<1x8x128xi1>, vector<1x8x128xf32>
    %54 = vector.broadcast %24 : f32 to vector<1x8x128xf32>
    %55 = arith.select %44, %54, %53 : vector<1x8x128xi1>, vector<1x8x128xf32>
    %c0_14 = arith.constant 0 : index
    %c0_15 = arith.constant 0 : index
    %c0_16 = arith.constant 0 : index
    %56 = vector.load %arg4[%c0_14, %c0_15, %c0_16] : memref<1x8x128xf32, #tpu.memory_space<vmem>>, vector<1x8x128xf32>
    tpu.vector_store %arg4[%c0_14, %c0_15, %c0_16], %55 {strides = array<i32>} : memref<1x8x128xf32, #tpu.memory_space<vmem>>, vector<1x8x128xf32>,
    return
  }
  func.func @transform_0(%arg0: i32) -> (i32, i32) {
    %c0_i32 = arith.constant 0 : i32
    %c0_i32_0 = arith.constant 0 : i32
    return %arg0, %c0_i32 : i32, i32
  }
  func.func @transform_1(%arg0: i32) -> (i32, i32) {
    %c0_i32 = arith.constant 0 : i32
    %c0_i32_0 = arith.constant 0 : i32
    return %arg0, %c0_i32 : i32, i32
  }
  func.func @transform_2(%arg0: i32) -> (i32, i32) {
    %c0_i32 = arith.constant 0 : i32
    %c0_i32_0 = arith.constant 0 : i32
    return %arg0, %c0_i32 : i32, i32
  }
  func.func @transform_3(%arg0: i32) -> (i32, i32, i32) {
    %c0_i32 = arith.constant 0 : i32
    %c0_i32_0 = arith.constant 0 : i32
    %c0_i32_1 = arith.constant 0 : i32
    return %arg0, %c0_i32, %c0_i32_0 : i32, i32, i32
  }
}

</mosaic_0001>

<bundles_post_ra>
// kernel: tpu_custom_call.1
= control target key start
LH: loop header
LB: loop body
LE: loop exit
PB: predicated region body
PF: predicated region fallthrough
CT: control target
= control target key end

     0   :  { %8 = vsyncpa [#allocation3], 0  ;;  %s252_s0 = inlined_call_operand.vmem [shape: f32[8,16], index: 0, kind: input, shape index: {}]   ;;  %s253_s1 = inlined_call_operand.vmem [shape: s32[8,1], index: 1, kind: input, shape index: {}]   ;;  %s254_s2 = inlined_call_operand.hbm [shape: f32[8,16], index: 2, kind: input, shape index: {}]   ;;  %s255_s3 = inlined_call_operand.hbm [shape: f32[1,8,128], index: 3, kind: output, shape index: {}]  }
   0x1   :  { %9 = vsyncpa [#allocation4], 0  ;;  %s19_s14 = sshll.u32 %s254_s2, 4  ;;  %s209_s15 = smov [#allocation2]   ;;  %s20_s14 = int_to_ptr.hbm [resolvable:$true] %s19_s14 }
   0x2   :  { %s21_s16 = sshll.u32 %s209_s15, 4  ;;  %s22_s16 = int_to_ptr.vmem [resolvable:$true] %s21_s16 }
   0x3   :  { %24 = dma.hbm_to_vmem [thread:$0]  %s20_s14, 128, %s22_s16, [#allocation3]  }
   0x4   :  { %205 = dma.done.wait [#allocation3], 128  }
   0x5   :  { %206 = vsyncadd [#allocation3], 4294967168  ;;  %v210_v0 = vmov 0   ;;  %vm32_vm0 = vcmask 130048   ;;  %v31_v1 = vld [vmem:[#allocation2] sm:$0xff]  ;;  %v44_v13 = vlaneseq  ;;  %vm61_vm1 = vcmask 7168  }
   0x6   :  { %151 = vset.pattern.permute.xlu1 %v210_v0  ;;  %152 = vset.pattern.permute.xlu0 %v210_v0  ;;  %v29_v2 = vld [vmem:[%s252_s0] sm:$0xff]  ;;  %v73_v3 = vsel %vm32_vm0, %v31_v1, 0.0  ;;  %s211_s20 = smov [#allocation5]   ;;  %s128_s25 = sshll.u32 %s255_s3, 4  ;;  %s129_s25 = int_to_ptr.hbm [resolvable:$true] %s128_s25 }
   0x7   :  { %v33_v4 = vsel %vm32_vm0, %v29_v2, -inf  ;;  %74 = vadd.xlane.f32.xlu1 %v73_v3  ;;  %v30_v5 = vld [vmem:[%s253_s1] sm:$0xff]  ;;  %v45_v15 = vand.u32 127, %v44_v13  ;;  %v110_v61 = vshrl.u32 %v44_v13, 7  ;;  %s126_s21 = sshll.u32 %s211_s20, 4  ;;  %s127_s21 = int_to_ptr.vmem [resolvable:$true] %s126_s21 }
   0x8   :  { %34 = vmax.xlane.f32.xlu0 %v33_v4 }
   0x9   :  { %vm113_vm3 = vcmp.eq.s32.totalorder %v110_v61, 2  ;;  %vm112_vm4 = vcmp.eq.s32.totalorder %v110_v61, 1  ;;  %vm111_vm5 = vcmp.eq.s32.totalorder %v110_v61, 0 }
  0x20   :  { %47 = vperm.xlu1 %151, %v30_v5  }
  0x7a   :  { %v75_v11 = vpop.xlane.xlu1 %74 }
  0x7b   :  { %v35_v6 = vpop.xlane.xlu0 %34  ;;  %v99_v18 = vsel %vm61_vm1, %v75_v11, 0.0 }
  0x7c   :  { %v36_v7 = vsub.f32 %v29_v2, %v35_v6 }
  0x7e   :  { %v37_v8 = vmul.f32 1.442695, %v36_v7  ;;  %v76_v12 = vmul.f32 %v36_v7, %v31_v1 }
  0x80   :  { %153 = vpow2.f32 %v37_v8  ;;  %v77_v14 = vsel %vm32_vm0, %v76_v12, 0.0 }
  0x86   :  { %v154_v9 = vpop.eup %153 }
  0x87   :  { %v39_v10 = vsel %vm32_vm0, %v154_v9, 0.0 }
  0x88   :  { %40 = vadd.xlane.f32.xlu0 %v39_v10 }
  0x90   :  { %78 = vadd.xlane.f32.xlu0 %v77_v14 }
  0x92   :  { %v48_v16 = vpop.permute.xlu1 %47 }
  0x93   :  { %vm49_vm2 = vcmp.eq.s32.totalorder %v45_v15, %v48_v16 }
  0x94   :  { %v50_v17 = vsel %vm49_vm2, %v36_v7, 0.0 }
  0x95   :  { %v51_v19 = vsel %vm32_vm0, %v50_v17, 0.0 }
  0x96   :  { %52 = vadd.xlane.f32.xlu2 %v51_v19 }
  0x98   :  { %100 = vadd.xlane.f32.xlu0 %v99_v18 }
  0xfb   :  { %v41_v20 = vpop.xlane.xlu0 %40 }
  0xfc   :  { %155 = vlog2.f32 %v41_v20 }
 0x102   :  { %v156_v21 = vpop.eup %155 }
 0x103   :  { %v43_v22 = vmul.f32 0.6931472, %v156_v21  ;;  %v79_v33 = vpop.xlane.xlu0 %78 }
 0x104   :  { %v80_v34 = vrot.slane %v79_v33, 4 }
 0x105   :  { %v62_v23 = vsel %vm61_vm1, %v43_v22, 0.0  ;;  %v87_v24 = vmul.f32 %v75_v11, %v43_v22 }
 0x106   :  { %63 = vadd.xlane.f32.xlu2 %v62_v23  ;;  %v81_v35 = vadd.f32 %v80_v34, %v79_v33 }
 0x107   :  { %v88_v28 = vsel %vm61_vm1, %v87_v24, 0.0 }
 0x108   :  { %v82_v37 = vrot.slane %v81_v35, 2 }
 0x109   :  { %v53_v25 = vpop.xlane.xlu2 %52 }
 0x10a   :  { %v54_v26 = vrot.slane %v53_v25, 4  ;;  %v83_v43 = vadd.f32 %v82_v37, %v81_v35 }
 0x10b   :  { %v101_v36 = vpop.xlane.xlu0 %100 }
 0x10c   :  { %v55_v27 = vadd.f32 %v54_v26, %v53_v25  ;;  %v102_v38 = vrot.slane %v101_v36, 4  ;;  %v84_v48 = vrot.slane %v83_v43, 1 }
 0x10e   :  { %89 = vadd.xlane.f32.xlu2 %v88_v28  ;;  %v56_v29 = vrot.slane %v55_v27, 2  ;;  %v103_v42 = vadd.f32 %v102_v38, %v101_v36  ;;  %v85_v54 = vadd.f32 %v84_v48, %v83_v43 }
 0x110   :  { %v57_v30 = vadd.f32 %v56_v29, %v55_v27  ;;  %v104_v46 = vrot.slane %v103_v42, 2 }
 0x112   :  { %v58_v31 = vrot.slane %v57_v30, 1  ;;  %v105_v53 = vadd.f32 %v104_v46, %v103_v42 }
 0x114   :  { %v59_v32 = vadd.f32 %v58_v31, %v57_v30  ;;  %v106_v57 = vrot.slane %v105_v53, 1 }
 0x116   :  { %138 = vpush %v59_v32  ;;  %v107_v60 = vadd.f32 %v106_v57, %v105_v53 }
 0x147   :  { %s139_s0 = spop %138 }
 0x179   :  { %v64_v39 = vpop.xlane.xlu2 %63 }
 0x17a   :  { %v65_v40 = vrot.slane %v64_v39, 4 }
 0x17c   :  { %v66_v41 = vadd.f32 %v65_v40, %v64_v39 }
 0x17e   :  { %v67_v44 = vrot.slane %v66_v41, 2 }
 0x180   :  { %v68_v45 = vadd.f32 %v67_v44, %v66_v41 }
 0x181   :  { %v90_v47 = vpop.xlane.xlu2 %89 }
 0x182   :  { %v91_v49 = vrot.slane %v90_v47, 4  ;;  %v69_v50 = vrot.slane %v68_v45, 1 }
 0x184   :  { %v92_v51 = vadd.f32 %v91_v49, %v90_v47  ;;  %v70_v52 = vadd.f32 %v69_v50, %v68_v45 }
 0x186   :  { %v93_v55 = vrot.slane %v92_v51, 2  ;;  %140 = vpush %v70_v52 }
 0x187   :  { %142 = vpush %v85_v54 }
 0x188   :  { %v94_v56 = vadd.f32 %v93_v55, %v92_v51 }
 0x18a   :  { %v95_v58 = vrot.slane %v94_v56, 1 }
 0x18c   :  { %v96_v59 = vadd.f32 %v95_v58, %v94_v56 }
 0x18e   :  { %144 = vpush %v96_v59 }
 0x18f   :  { %146 = vpush %v107_v60 }
 0x1b7   :  { %s141_s1 = spop %140 }
 0x1b8   :  { %s143_s22 = spop %142  ;;  %s72_s26 = ssub.f32 %s139_s0, %s141_s1 }
 0x1ba   :  { %v118_v1 = vstv %s72_s26 }
 0x1bf   :  { %s145_s27 = spop %144 }
 0x1c0   :  { %s98_s28 = ssub.f32 %s143_s22, %s145_s27  ;;  %s147_s29 = spop %146 }
 0x1c1   :  { %v114_v62 = vstv %s147_s29 }
 0x1c2   :  { %v116_v63 = vstv %s98_s28  ;;  %v115_v0 = vsel %vm113_vm3, %v114_v62, 0.0 }
 0x1c3   :  { %v117_v2 = vsel %vm112_vm4, %v116_v63, %v115_v0 }
 0x1c4   :  { %v119_v3 = vsel %vm111_vm5, %v118_v1, %v117_v2 }
 0x1c5   :  { %120 = vst [vmem:[#allocation5] sm:$0xff] %v119_v3 }
 0x1c6   :  { %131 = dma.vmem_to_hbm [thread:$0]  %s127_s21, 128, %s129_s25, [#allocation4]  }
 0x1c7   :  { %207 = dma.done.wait [#allocation4], 128  }
 0x1c8   :  { %208 = vsyncadd [#allocation4], 4294967168 }
 0x1c9   :  { %136 = vsyncpa [#allocation3], 1 }
 0x1ca   :  { %137 = vsyncpa [#allocation4], 1 }

</bundles_post_ra>
